<compile_context>
chip_gen: v7x
topology: tpu7x:2x2x1
jax: 0.10.0
libtpu: 0.0.40
codegen_flags: <defaults>
</compile_context>

<pallas_src>
import functools
import math

import jax
import jax.numpy as jnp
from jax.experimental import pallas as pl
from jax.experimental.pallas import tpu as pltpu

n_embd = 32
block_size = 32  # max context in the PyTorch module; mask is built for runtime T


def _head_kernel(x_ref, w3_ref, o_ref, *, H):
    # x_ref:  (T, C)   one batch element, auto-pipelined by BlockSpec
    # w3_ref: (3H, C)  rows [0:H]=Wk^T, [H:2H]=Wv^T, [2H:3H]=(Wq*scale)^T
    #                  block-resident (same block index every grid step)
    # o_ref:  (T, H)
    x = x_ref[...]
    w3 = w3_ref[...]
    T = x.shape[0]

    # All three projections in one MXU pass (transpose-RHS form):
    # (3H, C) x (T, C)^T -> (3H, T).
    proj_t = jax.lax.dot_general(
        w3, x, dimension_numbers=(((1,), (1,)), ((), ())),
        preferred_element_type=jnp.float32)                      # (3H, T)
    k_t = proj_t[:H, :]                                          # (H, T)  sublane slice
    v_t = proj_t[H:2 * H, :]                                     # (H, T)
    q = jnp.transpose(proj_t[2 * H:, :])                         # (T, H)  small XLU transpose

    # Scores: (T, H) x (H, T) -> (T, T), native MXU form; scale already folded
    # into the query rows of w3.
    wei = jnp.dot(q, k_t, preferred_element_type=jnp.float32)    # (T, T)

    # Causal mask generated in-kernel (no bias DMA, no VMEM residency).
    row = jax.lax.broadcasted_iota(jnp.int32, (T, T), 0)
    col = jax.lax.broadcasted_iota(jnp.int32, (T, T), 1)
    wei = jnp.where(col <= row, wei, -jnp.inf)

    # Numerically stable softmax; exact reciprocal (denominator is tiny).
    m = jnp.max(wei, axis=-1, keepdims=True)
    p = jnp.exp(wei - m)
    denom = jnp.sum(p, axis=-1, keepdims=True)
    attn = p * pl.reciprocal(denom, approx=False)

    # dropout: identity (eval mode)

    # out = attn @ v, with v supplied transposed (transpose-RHS MXU form).
    out = jax.lax.dot_general(
        attn, v_t, dimension_numbers=(((1,), (1,)), ((), ())),
        preferred_element_type=jnp.float32)                      # (T, H)
    o_ref[...] = out.astype(o_ref.dtype)


@jax.jit
def head_forward(x, w_key, w_query, w_value):
    """x: (B, T, C) float32; weights stored as (C, head_size) (i.e. W^T of nn.Linear)."""
    B, T, C = x.shape
    H = w_key.shape[1]
    assert H % 8 == 0, "head_size must be a multiple of 8 for the sublane k/v/q split"

    # Fold the 1/sqrt(head_size) softmax scale into the query projection and
    # fuse all three weights into one transposed operand (one DMA stream,
    # one MXU weight pass).
    scale = 1.0 / math.sqrt(H)
    w3 = jnp.concatenate(
        [w_key.T, w_value.T, (w_query * scale).T], axis=0)       # (3H, C)

    out = pl.pallas_call(
        functools.partial(_head_kernel, H=H),
        out_shape=jax.ShapeDtypeStruct((B, T, H), x.dtype),
        grid=(B,),
        in_specs=[
            pl.BlockSpec((None, T, C), lambda b: (b, 0, 0)),     # x: one batch per step
            pl.BlockSpec((3 * H, C), lambda b: (0, 0)),          # w3: block-resident
        ],
        out_specs=pl.BlockSpec((None, T, H), lambda b: (b, 0, 0)),
        compiler_params=pltpu.CompilerParams(
            dimension_semantics=("parallel",)),                  # shard batch across TCs (v7x)
    )(x, w3)
    return out


def reference_head(x, w_key, w_query, w_value):
    """Pure-JAX reference matching the PyTorch forward (eval mode)."""
    B, T, C = x.shape
    H = w_key.shape[1]
    k = x @ w_key
    q = x @ w_query
    v = x @ w_value
    wei = jnp.einsum("btd,bsd->bts", q, k) / math.sqrt(H)
    mask = jnp.tril(jnp.ones((T, T)))[None]
    wei = jnp.where(mask == 0, -jnp.inf, wei)
    wei = jax.nn.softmax(wei, axis=-1)
    return wei @ v


if __name__ == "__main__":
    key = jax.random.PRNGKey(0)
    k_x, k_k, k_q, k_v = jax.random.split(key, 4)

    B, T, C = 2, 8, n_embd
    head_size = 16

    x = jax.random.normal(k_x, (B, T, C), dtype=jnp.float32)

    # nn.Linear(n_embd, head_size, bias=False): weight (head_size, n_embd),
    # y = x @ weight.T  -> store directly as (n_embd, head_size).
    bound = 1.0 / math.sqrt(n_embd)
    w_key = jax.random.uniform(k_k, (C, head_size), jnp.float32, -bound, bound)
    w_query = jax.random.uniform(k_q, (C, head_size), jnp.float32, -bound, bound)
    w_value = jax.random.uniform(k_v, (C, head_size), jnp.float32, -bound, bound)

    out = head_forward(x, w_key, w_query, w_value)
    out = jax.block_until_ready(out)

    ref = reference_head(x, w_key, w_query, w_value)
    assert out.shape == (B, T, head_size)
    max_err = float(jnp.max(jnp.abs(out - ref)))
    assert jnp.allclose(out, ref, atol=1e-4, rtol=1e-4), (
        f"mismatch vs reference, max abs err = {max_err}")

    print("KERNEL_OK")
</pallas_src>

<mosaic_0001>
module attributes {stable_mosaic.version = 11 : i64} {
  func.func @_head_kernel(%arg0: i32, %arg1: memref<1x8x32xf32, #tpu.memory_space<vmem>>, %arg2: memref<48x32xf32, #tpu.memory_space<vmem>>, %arg3: memref<1x8x16xf32, #tpu.memory_space<vmem>>) attributes {dimension_semantics = [#tpu.dimension_semantics<parallel>], iteration_bounds = array<i64: 2>, scalar_prefetch = 0 : i64, scratch_operands = 0 : i64, tpu.core_type = #tpu.core_type<tc>, window_params = [{transform_indices = @transform_0, window_bounds = array<i64: 1, 8, 32>}, {pipeline_mode = #tpu.pipeline_mode<synchronous>, transform_indices = @transform_1, window_bounds = array<i64: 48, 32>}, {transform_indices = @transform_2, window_bounds = array<i64: 1, 8, 16>}]} {
    %c0 = arith.constant 0 : index
    %c0_0 = arith.constant 0 : index
    %c0_1 = arith.constant 0 : index
    %0 = vector.load %arg1[%c0, %c0_0, %c0_1] : memref<1x8x32xf32, #tpu.memory_space<vmem>>, vector<1x8x32xf32>
    %1 = vector.shape_cast %0 : vector<1x8x32xf32> to vector<8x32xf32>
    %c0_2 = arith.constant 0 : index
    %c0_3 = arith.constant 0 : index
    %2 = vector.load %arg2[%c0_2, %c0_3] : memref<48x32xf32, #tpu.memory_space<vmem>>, vector<48x32xf32>
    %cst = arith.constant dense<0.000000e+00> : vector<48x8xf32>
    %3 = tpu.matmul %2, %1, %cst {dimension_numbers = #tpu.dot_dimension_numbers<[1], [1], [0], [0], [0, 0, 1, 0], [], []>} : vector<48x32xf32>, vector<8x32xf32>, vector<48x8xf32> -> vector<48x8xf32>
    %4 = vector.extract_strided_slice %3 {offsets = [0, 0], sizes = [16, 8], strides = [1, 1]} : vector<48x8xf32> to vector<16x8xf32>
    %5 = vector.extract_strided_slice %3 {offsets = [16, 0], sizes = [16, 8], strides = [1, 1]} : vector<48x8xf32> to vector<16x8xf32>
    %6 = vector.extract_strided_slice %3 {offsets = [32, 0], sizes = [16, 8], strides = [1, 1]} : vector<48x8xf32> to vector<16x8xf32>
    %7 = tpu.transpose %6, [1, 0] : vector<16x8xf32> -> vector<8x16xf32>
    %cst_4 = arith.constant dense<0.000000e+00> : vector<8x8xf32>
    %8 = tpu.matmul %7, %4, %cst_4 {dimension_numbers = #tpu.dot_dimension_numbers<[1], [0], [0], [1], [0, 0, 1, 1], [], []>} : vector<8x16xf32>, vector<16x8xf32>, vector<8x8xf32> -> vector<8x8xf32>
    %9 = tpu.iota {dimensions = array<i32: 0>} : vector<8x8xi32>
    %10 = tpu.iota {dimensions = array<i32: 1>} : vector<8x8xi32>
    %11 = arith.cmpi sle, %10, %9 : vector<8x8xi32>
    %cst_5 = arith.constant 0xFF800000 : f32
    %12 = vector.broadcast %cst_5 : f32 to vector<8x8xf32>
    %13 = arith.select %11, %8, %12 : vector<8x8xi1>, vector<8x8xf32>
    %cst_6 = arith.constant dense<0xFF800000> : vector<8xf32>
    %14 = vector.multi_reduction <maximumf>, %13, %cst_6 [1] : vector<8x8xf32> to vector<8xf32>
    %15 = vector.shape_cast %14 : vector<8xf32> to vector<8x1xf32>
    %16 = vector.broadcast %15 : vector<8x1xf32> to vector<8x8xf32>
    %17 = arith.subf %13, %16 : vector<8x8xf32>
    %18 = math.exp %17 : vector<8x8xf32>
    %cst_7 = arith.constant dense<0.000000e+00> : vector<8xf32>
    %19 = vector.multi_reduction <add>, %18, %cst_7 [1] : vector<8x8xf32> to vector<8xf32>
    %20 = vector.shape_cast %19 : vector<8xf32> to vector<8x1xf32>
    %21 = tpu.reciprocal %20 : vector<8x1xf32> -> vector<8x1xf32>
    %22 = vector.broadcast %21 : vector<8x1xf32> to vector<8x8xf32>
    %23 = arith.mulf %18, %22 : vector<8x8xf32>
    %cst_8 = arith.constant dense<0.000000e+00> : vector<8x16xf32>
    %24 = tpu.matmul %23, %5, %cst_8 {dimension_numbers = #tpu.dot_dimension_numbers<[1], [1], [0], [0], [0, 0, 1, 0], [], []>} : vector<8x8xf32>, vector<16x8xf32>, vector<8x16xf32> -> vector<8x16xf32>
    %c0_9 = arith.constant 0 : index
    %c0_10 = arith.constant 0 : index
    %c0_11 = arith.constant 0 : index
    %25 = vector.load %arg3[%c0_9, %c0_10, %c0_11] : memref<1x8x16xf32, #tpu.memory_space<vmem>>, vector<1x8x16xf32>
    %26 = vector.shape_cast %25 : vector<1x8x16xf32> to vector<8x16xf32>
    %27 = vector.shape_cast %24 : vector<8x16xf32> to vector<1x8x16xf32>
    tpu.vector_store %arg3[%c0_9, %c0_10, %c0_11], %27 {strides = array<i32>} : memref<1x8x16xf32, #tpu.memory_space<vmem>>, vector<1x8x16xf32>,
    return
  }
  func.func @transform_0(%arg0: i32) -> (i32, i32, i32) {
    %c0_i32 = arith.constant 0 : i32
    %c0_i32_0 = arith.constant 0 : i32
    %c0_i32_1 = arith.constant 0 : i32
    return %arg0, %c0_i32, %c0_i32_0 : i32, i32, i32
  }
  func.func @transform_1(%arg0: i32) -> (i32, i32) {
    %c0_i32 = arith.constant 0 : i32
    %c0_i32_0 = arith.constant 0 : i32
    %c0_i32_1 = arith.constant 0 : i32
    return %c0_i32, %c0_i32_0 : i32, i32
  }
  func.func @transform_2(%arg0: i32) -> (i32, i32, i32) {
    %c0_i32 = arith.constant 0 : i32
    %c0_i32_0 = arith.constant 0 : i32
    %c0_i32_1 = arith.constant 0 : i32
    return %arg0, %c0_i32, %c0_i32_0 : i32, i32, i32
  }
}

</mosaic_0001>

<bundles_post_ra>
// kernel: head_forward.1
= control target key start
LH: loop header
LB: loop body
LE: loop exit
PB: predicated region body
PF: predicated region fallthrough
CT: control target
= control target key end

     0   :  { %7 = vsyncpa [#allocation3], 0  ;;  %s870_s0 = inlined_call_operand.vmem [shape: f32[2,8,32], index: 0, kind: input, shape index: {}]   ;;  %s871_s1 = inlined_call_operand.vmem [shape: f32[48,32], index: 1, kind: input, shape index: {}]   ;;  %s872_s2 = inlined_call_operand.hbm [shape: f32[2,8,16], index: 2, kind: output, shape index: {}]  }
   0x1   :  { %9 = vsyncpa [#allocation3 + $0x1], 0  ;;  %s735_s9 = smov 0   ;;  %s737_s10 = smov 0  }
   0x2   :  { %s739_s11 = smov 0   ;;  %s741_s12 = smov 0  }
   0x3 LB: > { %s756_s13 = sadd.s32 4294967295, %s714_s12   ;;  %s540_s14 = sadd.s32 4294967294, %s714_s12   ;;  %s714_s12 = sphi %s741_s12, %s878_s12   ;;  %s710_s11 = sphi %s739_s11, %s877_s11   ;;  %s706_s10 = sphi %s737_s10, %s876_s10   ;;  %s702_s9 = sphi %s735_s9, %s875_s9  }
   0x4   : > { %s760_s15 = sadd.s32 1, %s714_s12   ;;  %s69_s16 = sadd.s32 1, %s710_s11 }
   0x5   : > { %s66_s17 = ssub.s32 %s714_s12, %s760_s15  ;;  %p79_p0 = scmp.ne.s32.totalorder %s710_s11, %s706_s10 }
   0x6   : > { %p67_p1 = scmp.eq.s32.totalorder %s66_s17, 0  ;;  %p80_p2 = scmp.eq.s32.totalorder %s756_s13, 1 }
   0x7   : > { %p85_p3 = scmp.ne.s32.totalorder %s706_s10, %s702_s9  ;;  %p86_p4 = scmp.eq.s32.totalorder %s540_s14, 1 }
   0x8   : > { %s771_s18 = scalar_select %p67_p1, %s710_s11, %s69_s16  }
   0x9   : > { %p773_p5 = por %p80_p2, %p79_p0  ;;  %p777_p6 = por %p86_p4, %p85_p3 }
   0xa   : > { %p543_p7 = scmp.ge.s32.totalorder %s714_s12, 1  ;;  %p114_p8 = scmp.lt.s32.totalorder %s714_s12, 3 }
   0xc   : > { %p115_p9 = pnand %p543_p7, %p114_p8 }
   0xd   : > { %p135_p10 = scmp.lt.s32.totalorder (!%p115_p9), %s756_s13, 1  ;;  %vm146_vm0 = vcmask (!%p115_p9), 261120   ;;  %v140_v0 = vld [vmem:[%s871_s1] sm:$0xff] (!%p115_p9)  ;;  %v141_v2 = vld [vmem:[%s871_s1 + $0x8] sm:$0xff] (!%p115_p9)  ;;  %v142_v3 = vld [vmem:[%s871_s1 + $0x10] sm:$0xff] (!%p115_p9)  ;;  %v716_v7 = vmov (!%p115_p9), 0.0|0.0   ;;  %v369_v18 = vlaneseq (!%p115_p9) }
   0xe   : > { %118 = sbr.rel (%p115_p9) target bundleno = 1133 (0x46d), region = 28  ;;  %576 = vmatprep.mubr.msk.f32.mxu0 (!%p115_p9), %vm146_vm0, %v140_v0  ;;  %v143_v4 = vld [vmem:[%s871_s1 + $0x18] sm:$0xff] (!%p115_p9)  ;;  %v144_v5 = vld [vmem:[%s871_s1 + $0x20] sm:$0xff] (!%p115_p9)  ;;  %v145_v6 = vld [vmem:[%s871_s1 + $0x28] sm:$0xff] (!%p115_p9)  ;;  %599 = vmatprep.subr.bf16.mxu1 (!%p115_p9), %v716_v7  ;;  %vm717_vm1 = vmmov (!%p115_p9), 0   ;;  %v718_v8 = vmov (!%p115_p9), 0.0  }
   0xf   : > { %589 = vmatprep.mubr.msk.f32.mxu1 (!%p115_p9), %vm717_vm1, %v718_v8  ;;  %vm375_vm2 = vcmask (!%p115_p9), 64512   ;;  %vm295_vm3 = vcmask (!%p115_p9), 130048   ;;  %v370_v19 = vshrl.u32 (!%p115_p9), %v369_v18, 7  ;;  %v372_v20 = vand.u32 (!%p115_p9), 127, %v369_v18  ;;  %s132_s16 = sand.u32 (!%p115_p9), 1, %s706_s10   ;;  %s558_s21 = sshll.u32 (!%p115_p9), %s756_s13, 7 }
  0x10   : > { %vm604_vm4 = vmpackc.low (!%p115_p9), %vm375_vm2, %vm375_vm2  ;;  %s544_s17 = sshll.u32 (!%p115_p9), %s132_s16, 3  ;;  %s827_s26 = scalar_lea.hbm (!%p115_p9), %s872_s2, %s558_s21 }
  0x11   : > { %vm373_vm5 = vcmp.le.s32.totalorder (!%p115_p9), %v372_v20, %v370_v19  ;;  %s134_s22 = scalar_lea.vmem (!%p115_p9), [#allocation2], %s544_s17 }
  0x15   : > { %s136_s23 = scalar_select %p135_p10, %s756_s13, 1 }
  0x16   : > { %s719_s13 = smov [#allocation2]  }
  0x17   : > { %s545_s24 = sshll.u32 %s136_s23, 3  ;;  %s481_s23 = sshll.u32 %s134_s22, 4  ;;  %s829_s23 = int_to_ptr.vmem [resolvable:$true] %s481_s23 }
  0x18   : > { %s138_s27 = scalar_lea.vmem %s870_s0, %s545_s24  ;;  %s652_s28 = scalar_lea.vmem %s829_s23, 128 }
  0x19   : > { %v139_v1 = vld [vmem:[%s138_s27] sm:$0xff]  ;;  %s468_s27 = scalar_lea.sflag [#allocation3], %s132_s16  ;;  %p653_p11 = scmp.ne.s32.totalorder %s829_s23, %s652_s28 }
  0x1a   : > { %574 = vmatprep.subr.msk.mxu0 %vm146_vm0, %v139_v1  ;;  %s656_s29 = sshll.u32 %s719_s13, 4  ;;  %s657_s29 = int_to_ptr.vmem [resolvable:$false] %s656_s29 }
  0x1b   : > { %575 = vmatpush3.xpose.msk.msra.mxu0 %vm146_vm0, %v139_v1  ;;  %p654_p12 = pnand %p653_p11, %p773_p5  ;;  %s658_s30 = scalar_lea.vmem %s657_s29, 256 }
  0x1c   : > { %p659_p0 = scmp.lt.s32.totalorder %s829_s23, %s657_s29  ;;  %p660_p1 = scmp.lt.s32.totalorder %s658_s30, %s652_s28 }
  0x1d   : > { %p655_p13 = pneg %p654_p12 }
  0x1e   : > { %577 = vmatmul.mubr.msk.f32.vlgmr.msra.gmra.mrb[0].mxu0 %vm146_vm0, %v141_v2  ;;  %p661_p2 = por %p660_p1, %p659_p0 }
  0x1f   : > { %579 = vmatprep.mubr.msk.f32.mxu0 %vm146_vm0, %v142_v3 }
  0x20   : > { %p662_p3 = pnand %p661_p2, %p655_p13 }
  0x22   : > { %580 = vmatmul.mubr.msk.f32.gmra.mrb[2].mxu0 %vm146_vm0, %v143_v4 }
  0x23   : > { %582 = vmatprep.mubr.msk.f32.mxu0 %vm146_vm0, %v144_v5 }
  0x26   : > { %583 = vmatmul.mubr.msk.f32.gmra.mrb[4].mxu0 %vm146_vm0, %v145_v6 }
  0xf1   : > { %v578_v9 = vpop.f32.mrb[0].mxu0 }
  0xf2   : > { %v234_v10 = vpop.f32.mrb[1].mxu0 }
  0xf3   : > { %v600_v11 = vpack.c.bf16 %v578_v9, %v234_v10 }
  0xf5   : > { %v581_v12 = vpop.f32.mrb[2].mxu0  ;;  %601 = vmatpush3.bf16.msra.mxu1 %v600_v11 }
  0xf6   : > { %v244_v13 = vpop.f32.mrb[3].mxu0  ;;  %602 = vmatprep.subr.bf16.mxu1 %v716_v7 }
  0xf7   : > { %v603_v14 = vpack.c.bf16 %v581_v12, %v244_v13 }
  0xf9   : > { %v584_v15 = vpop.f32.mrb[4].mxu0 }
  0xfa   : > { %v254_v16 = vpop.f32.mrb[5].mxu0 }
  0xfb   : > { %263 = vxpose.xlu0.b32.start [1/2] (short) (narrow) %v254_v16, 8 }
  0xff   : > { %264 = vxpose.xlu0.b32.end [2/2] (short) (narrow) %v584_v15, 8 }
 0x17b   : > { %v279_v17 = vpop.trf.xlu0 }
 0x17c   : > { %590 = vmatmul.mubr.msk.f32.vlgmr.msra.gmra.mrb[0].mxu1 %vm295_vm3, %v279_v17 }
 0x17d   : > { %605 = vmatpush3.bf16.xpose.msk.msra.mxu1 %vm604_vm4, %v603_v14  ;;  %596 = vmatprep.mubr.msk.f32.mxu1 %vm717_vm1, %v718_v8 }
 0x24f   : > { %v365_v21 = vpop.f32.mrb[0].mxu1 }
 0x250   : > { %v374_v22 = vsel %vm373_vm5, %v365_v21, -inf  ;;  %v591_v23 = vpop.f32.mrb[1].mxu1 }
 0x251   : > { %v376_v24 = vsel %vm375_vm2, %v374_v22, -inf }
 0x252   : > { %377 = vmax.xlane.f32.xlu1 %v376_v24 }
 0x2df   : > { %v378_v25 = vpop.xlane.xlu1 %377 }
 0x2e0   : > { %v379_v26 = vsub.f32 %v374_v22, %v378_v25 }
 0x2e2   : > { %v380_v27 = vmul.f32 1.442695, %v379_v26 }
 0x2e4   : > { %648 = vpow2.f32 %v380_v27 }
 0x2ee   : > { %v649_v28 = vpop.eup %648 }
 0x2ef   : > { %v382_v29 = vsel %vm375_vm2, %v649_v28, 0.0 }
 0x2f0   : > { %383 = vadd.xlane.f32.xlu1 %v382_v29 }
 0x37d   : > { %v384_v30 = vpop.xlane.xlu1 %383 }
 0x37e   : > { %650 = vrcp.f32 %v384_v30 }
 0x388   : > { %v651_v31 = vpop.eup %650 }
 0x389   : > { %v386_v32 = vmul.f32 %v651_v31, %v649_v28 }
 0x38b   : > { %597 = vmatmul.mubr.msk.f32.vlgmr.msra.gmra.mrb[2].mxu1 %vm375_vm2, %v386_v32 }
 0x45e   : > { %v462_v33 = vpop.f32.mrb[2].mxu1 }
 0x45f   : > { %466 = vst.msk [vmem:[%s134_s22] sm:$0xff] %vm295_vm3, %v462_v33  ;;  %v598_v34 = vpop.f32.mrb[3].mxu1 }
 0x460   : > { %665 = shalt.err (!%p662_p3)
}
 0x461   : > { %s666_s3 = scalar_lea.hbm %s827_s26, 128  ;;  %s670_s6 = scalar_lea.hbm %s872_s2, 256 }
 0x462   : > { %p667_p4 = scmp.ne.s32.totalorder %s827_s26, %s666_s3  ;;  %p671_p9 = scmp.lt.u32.totalorder %s827_s26, %s872_s2 }
 0x463   : > { %p672_p10 = scmp.lt.u32.totalorder %s670_s6, %s666_s3  ;;  %p674_p12 = scmp.lt.u32.totalorder %s666_s3, %s827_s26 }
 0x464   : > { %p668_p7 = pnand %p667_p4, %p773_p5 }
 0x465   : > { %p673_p11 = por %p672_p10, %p671_p9 }
 0x466   : > { %p669_p8 = pneg %p668_p7 }
 0x467   : > { %p675_p13 = por %p674_p12, %p673_p11 }
 0x469   : > { %p676_p0 = pnand %p675_p13, %p669_p8 }
 0x46b   : > { %679 = shalt.err (!%p676_p0)
}
 0x46c   : > { %606 = dma.vmem_to_hbm [thread:$0]  (%p773_p5), %s829_s23, 128, %s827_s26, %s468_s27  }
 0x46d PF: > { %p612_p1 = scmp.ge.s32.totalorder %s714_s12, 2  ;;  %s493_s14 = sand.u32 1, %s702_s9  }
 0x46e   : > { %s494_s16 = scalar_lea.sflag [#allocation3], %s493_s14 }
 0x46f   : > { %p609_p2 = pnand %p612_p1, %p777_p6 }
 0x471   : > { %697 = dma.done.wait (!%p609_p2), %s494_s16, 128  }
 0x472   : > { %699 = vsyncadd (!%p609_p2), %s494_s16, 4294967168  ;;  %p12_p3 = scmp.ge.s32.totalorder %s760_s15, 4   ;;  %s875_s9 = smov %s706_s10 }
 0x473   : > { %s876_s10 = smov %s710_s11  ;;  %s877_s11 = smov %s771_s18 }
 0x474   : > { %s878_s12 = smov %s760_s15  ;;  %14 = sbr.rel (!%p12_p3) target bundleno = 3 (0x3), region = 63 }
 0x47b   :  { %499 = vsyncpa [#allocation3], 1 }
 0x47c   :  { %501 = vsyncpa [#allocation3 + $0x1], 1 }

</bundles_post_ra>
